<compile_context>
chip_gen: v5e
topology: v5e:2x2
jax: 0.10.0
libtpu: 0.0.40
codegen_flags: <defaults>
</compile_context>

<pallas_src>
import math

import jax
import jax.numpy as jnp
from jax import lax
from jax.experimental import pallas as pl
from jax.experimental.pallas import tpu as pltpu

BN_EPS = 1e-5                      # PyTorch BatchNorm2d default
VMEM_LIMIT = 48 * 1024 * 1024      # generous scoped-VMEM ceiling, < any chip's physical


# --------------------------------------------------------------------------
# Kernels
# --------------------------------------------------------------------------
def _conv3x3_bn_relu_kernel(x_ref, w_ref, b_ref, o_ref, xb_ref):
    # x_ref : (1, H, W, C)   NHWC input (one batch element)
    # w_ref : (9, C, O)      BN-folded weights, tap-major (dy*3+dx)
    # b_ref : (1, O)         BN-folded bias
    # o_ref : (1, H*W, O)    flattened-spatial output
    # xb_ref: (H+2, W+2, C)  VMEM scratch with zero halo
    H, W, C = x_ref.shape[1], x_ref.shape[2], x_ref.shape[3]
    O = o_ref.shape[2]
    xb_ref[...] = jnp.zeros(xb_ref.shape, xb_ref.dtype)
    xb_ref[1:H + 1, 1:W + 1, :] = x_ref[0].astype(xb_ref.dtype)
    acc = jnp.zeros((H * W, O), jnp.float32)
    for dy in range(3):                          # statically unrolled: 9 MXU matmuls
        for dx in range(3):
            xs = xb_ref[dy:dy + H, dx:dx + W, :].reshape(H * W, C)
            acc = acc + jnp.dot(xs, w_ref[dy * 3 + dx],
                                preferred_element_type=jnp.float32)
    acc = jnp.maximum(acc + b_ref[...], 0.0)     # folded BN shift + fused ReLU
    o_ref[0] = acc.astype(o_ref.dtype)


def _decoder_block_kernel(x_ref, rh_ref, rw_ref, w1_ref, b1_ref, w2_ref, b2_ref,
                          o_ref, up_ref, mid_ref):
    # Fused DecoderBlock (skip=None): up(2x bilinear) -> conv1 -> conv2.
    # x_ref : (1, H, W, C)
    # rh_ref: (2H, H), rw_ref: (2W, W)   align_corners=True interp matrices
    # w1_ref: (9, C, M), b1_ref: (1, M)  conv1 (BN folded)
    # w2_ref: (9, M, O), b2_ref: (1, O)  conv2 (BN folded)
    # o_ref : (1, 2H*2W, O)
    # up_ref : VMEM (2H+2, 2W+2, C)  upsampled input, zero halo
    # mid_ref: VMEM (2H+2, 2W+2, M)  conv1 output, zero halo
    H, W, C = x_ref.shape[1], x_ref.shape[2], x_ref.shape[3]
    H2, W2 = 2 * H, 2 * W
    M = w1_ref.shape[2]
    O = w2_ref.shape[2]

    # Zero halos every grid step (keeps per-core scratch correct under megacore).
    up_ref[...] = jnp.zeros(up_ref.shape, up_ref.dtype)
    mid_ref[...] = jnp.zeros(mid_ref.shape, mid_ref.dtype)

    # ---- bilinear 2x upsample (separable: rows then cols) -------------------
    x = x_ref[0].astype(jnp.float32)                                  # (H, W, C)
    t = jnp.dot(rh_ref[...], x.reshape(H, W * C),
                preferred_element_type=jnp.float32).reshape(H2, W, C)
    rw_b = jnp.broadcast_to(rw_ref[...][None], (H2, W2, W))
    up = lax.dot_general(rw_b, t,
                         dimension_numbers=(((2,), (1,)), ((0,), (0,))),
                         preferred_element_type=jnp.float32)          # (H2, W2, C)
    up_ref[1:H2 + 1, 1:W2 + 1, :] = up

    # ---- conv1 (3x3, pad=1) + folded BN + ReLU -------------------------------
    acc = jnp.zeros((H2 * W2, M), jnp.float32)
    for dy in range(3):
        for dx in range(3):
            xs = up_ref[dy:dy + H2, dx:dx + W2, :].reshape(H2 * W2, C)
            acc = acc + jnp.dot(xs, w1_ref[dy * 3 + dx],
                                preferred_element_type=jnp.float32)
    acc = jnp.maximum(acc + b1_ref[...], 0.0)
    mid_ref[1:H2 + 1, 1:W2 + 1, :] = acc.reshape(H2, W2, M)

    # ---- conv2 (3x3, pad=1) + folded BN + ReLU -------------------------------
    acc2 = jnp.zeros((H2 * W2, O), jnp.float32)
    for dy in range(3):
        for dx in range(3):
            xs = mid_ref[dy:dy + H2, dx:dx + W2, :].reshape(H2 * W2, M)
            acc2 = acc2 + jnp.dot(xs, w2_ref[dy * 3 + dx],
                                  preferred_element_type=jnp.float32)
    acc2 = jnp.maximum(acc2 + b2_ref[...], 0.0)
    o_ref[0] = acc2.astype(o_ref.dtype)


def _bilinear_up2x_kernel(x_ref, rh_ref, rw_ref, o_ref):
    # Standalone UpsamplingBilinear2d(scale_factor=2) (used on the skip path).
    x = x_ref[0].astype(jnp.float32)
    H, W, C = x.shape
    H2, W2 = o_ref.shape[1], o_ref.shape[2]
    t = jnp.dot(rh_ref[...], x.reshape(H, W * C),
                preferred_element_type=jnp.float32).reshape(H2, W, C)
    rw_b = jnp.broadcast_to(rw_ref[...][None], (H2, W2, W))
    out = lax.dot_general(rw_b, t,
                          dimension_numbers=(((2,), (1,)), ((0,), (0,))),
                          preferred_element_type=jnp.float32)
    o_ref[0] = out.astype(o_ref.dtype)


# --------------------------------------------------------------------------
# Wrappers
# --------------------------------------------------------------------------
def _fold_bn_into_conv(p):
    """Fold eval-mode BatchNorm into the conv: returns ((9,Cin,Cout), (1,Cout))."""
    inv = p["gamma"] * lax.rsqrt(p["var"] + BN_EPS)                   # (Cout,)
    w = p["w"].astype(jnp.float32) * inv[:, None, None, None]         # (Cout,Cin,3,3)
    bias = p["beta"] - p["mean"] * inv
    c_out, c_in = p["w"].shape[0], p["w"].shape[1]
    w = jnp.transpose(w, (2, 3, 1, 0)).reshape(9, c_in, c_out)        # tap-major
    return w, bias.reshape(1, c_out)


def _interp_matrix_2x(n_in):
    """(2n, n) align_corners=True linear interp matrix (UpsamplingBilinear2d)."""
    n_out = 2 * n_in
    src = jnp.arange(n_out, dtype=jnp.float32) * (n_in - 1) / (n_out - 1)
    lo = jnp.clip(jnp.floor(src).astype(jnp.int32), 0, max(n_in - 2, 0))
    frac = src - lo.astype(jnp.float32)
    rows = jnp.arange(n_out)
    m = jnp.zeros((n_out, n_in), jnp.float32)
    m = m.at[rows, lo].add(1.0 - frac)
    m = m.at[rows, jnp.minimum(lo + 1, n_in - 1)].add(frac)
    return m


def conv3x3_bn_relu(x, p):
    """Fused Conv2dReLU (3x3 conv pad=1, no bias) + eval BatchNorm + ReLU. NHWC."""
    B, H, W, C = x.shape
    w, b = _fold_bn_into_conv(p)
    O = w.shape[2]
    flops = 2 * B * H * W * 9 * C * O
    bytes_accessed = 4 * (B * H * W * C + 9 * C * O + O + B * H * W * O)
    out = pl.pallas_call(
        _conv3x3_bn_relu_kernel,
        out_shape=jax.ShapeDtypeStruct((B, H * W, O), x.dtype),
        grid_spec=pltpu.PrefetchScalarGridSpec(
            num_scalar_prefetch=0,
            grid=(B,),
            in_specs=[
                pl.BlockSpec((1, H, W, C), lambda bi: (bi, 0, 0, 0)),
                pl.BlockSpec((9, C, O), lambda bi: (0, 0, 0)),
                pl.BlockSpec((1, O), lambda bi: (0, 0)),
            ],
            out_specs=pl.BlockSpec((1, H * W, O), lambda bi: (bi, 0, 0)),
            scratch_shapes=[pltpu.VMEM((H + 2, W + 2, C), jnp.float32)],
        ),
        compiler_params=pltpu.CompilerParams(
            dimension_semantics=("parallel",),
            vmem_limit_bytes=VMEM_LIMIT),
        cost_estimate=pl.CostEstimate(flops=flops, transcendentals=0,
                                      bytes_accessed=bytes_accessed),
    )(x, w, b)
    return out.reshape(B, H, W, O)    # free row-major reshape


def decoder_block_fused(x, p1, p2):
    """Fused DecoderBlock forward (skip=None): 2x upsample + conv1 + conv2."""
    B, H, W, C = x.shape
    H2, W2 = 2 * H, 2 * W
    w1, b1 = _fold_bn_into_conv(p1)          # (9, C, M), (1, M)
    w2, b2 = _fold_bn_into_conv(p2)          # (9, M, O), (1, O)
    M, O = w1.shape[2], w2.shape[2]
    rh = _interp_matrix_2x(H)
    rw = _interp_matrix_2x(W)
    flops = 2 * B * (H2 * H * W * C + H2 * W2 * W * C
                     + H2 * W2 * 9 * C * M + H2 * W2 * 9 * M * O)
    bytes_accessed = 4 * (B * H * W * C + H2 * H + W2 * W + 9 * C * M + M
                          + 9 * M * O + O + B * H2 * W2 * O)
    out = pl.pallas_call(
        _decoder_block_kernel,
        out_shape=jax.ShapeDtypeStruct((B, H2 * W2, O), x.dtype),
        grid_spec=pltpu.PrefetchScalarGridSpec(
            num_scalar_prefetch=0,
            grid=(B,),
            in_specs=[
                pl.BlockSpec((1, H, W, C), lambda bi: (bi, 0, 0, 0)),
                pl.BlockSpec((H2, H), lambda bi: (0, 0)),
                pl.BlockSpec((W2, W), lambda bi: (0, 0)),
                pl.BlockSpec((9, C, M), lambda bi: (0, 0, 0)),
                pl.BlockSpec((1, M), lambda bi: (0, 0)),
                pl.BlockSpec((9, M, O), lambda bi: (0, 0, 0)),
                pl.BlockSpec((1, O), lambda bi: (0, 0)),
            ],
            out_specs=pl.BlockSpec((1, H2 * W2, O), lambda bi: (bi, 0, 0)),
            scratch_shapes=[
                pltpu.VMEM((H2 + 2, W2 + 2, C), jnp.float32),
                pltpu.VMEM((H2 + 2, W2 + 2, M), jnp.float32),
            ],
        ),
        compiler_params=pltpu.CompilerParams(
            dimension_semantics=("parallel",),
            vmem_limit_bytes=VMEM_LIMIT),
        cost_estimate=pl.CostEstimate(flops=flops, transcendentals=0,
                                      bytes_accessed=bytes_accessed),
    )(x, rh, rw, w1, b1, w2, b2)
    return out.reshape(B, H2, W2, O)


def bilinear_upsample2x(x):
    """nn.UpsamplingBilinear2d(scale_factor=2) on NHWC input (skip path)."""
    B, H, W, C = x.shape
    H2, W2 = 2 * H, 2 * W
    rh = _interp_matrix_2x(H)
    rw = _interp_matrix_2x(W)
    flops = 2 * B * (H2 * H * W * C + H2 * W2 * W * C)
    bytes_accessed = 4 * (B * H * W * C + rh.size + rw.size + B * H2 * W2 * C)
    return pl.pallas_call(
        _bilinear_up2x_kernel,
        out_shape=jax.ShapeDtypeStruct((B, H2, W2, C), x.dtype),
        grid_spec=pltpu.PrefetchScalarGridSpec(
            num_scalar_prefetch=0,
            grid=(B,),
            in_specs=[
                pl.BlockSpec((1, H, W, C), lambda bi: (bi, 0, 0, 0)),
                pl.BlockSpec((H2, H), lambda bi: (0, 0)),
                pl.BlockSpec((W2, W), lambda bi: (0, 0)),
            ],
            out_specs=pl.BlockSpec((1, H2, W2, C), lambda bi: (bi, 0, 0, 0)),
        ),
        compiler_params=pltpu.CompilerParams(
            dimension_semantics=("parallel",),
            vmem_limit_bytes=VMEM_LIMIT),
        cost_estimate=pl.CostEstimate(flops=flops, transcendentals=0,
                                      bytes_accessed=bytes_accessed),
    )(x, rh, rw)


def decoder_cup_forward(hidden_states, params, config, features=None):
    """DecoderCup.forward.  hidden_states: (B, n_patch, hidden) -> NCHW output."""
    B, n_patch, hidden = hidden_states.shape
    h = w = int(round(math.sqrt(n_patch)))
    # PyTorch: permute(0,2,1).contiguous().view(B, hidden, h, w) (NCHW);
    # in NHWC this is a free reshape.
    x = hidden_states.reshape(B, h, w, hidden)

    x = conv3x3_bn_relu(x, params["conv_more"])            # conv_more
    n_skip = config["n_skip"]
    for i, blk in enumerate(params["blocks"]):
        skip = None
        if features is not None and i < n_skip:
            skip = features[i]                              # NCHW, as in PyTorch
        if skip is None:
            # Fully fused decoder block: the upsampled tensor and the conv1
            # output never round-trip through HBM.
            x = decoder_block_fused(x, blk["conv1"], blk["conv2"])
        else:
            x = bilinear_upsample2x(x)
            x = jnp.concatenate([x, jnp.transpose(skip, (0, 2, 3, 1))], axis=-1)
            x = conv3x3_bn_relu(x, blk["conv1"])
            x = conv3x3_bn_relu(x, blk["conv2"])
    # Return NCHW like the PyTorch module.
    # TODO(synk): training-mode BatchNorm (batch statistics) is not implemented;
    # eval-mode running-stats BN is folded into the conv weights/bias.
    # TODO(synk): for full-size feature maps (e.g. 224x224 at real TransUNet
    # scale) add spatial tiling (second grid axis over output rows) instead of
    # one block per batch element.
    return jnp.transpose(x, (0, 3, 1, 2))


# --------------------------------------------------------------------------
# Pure-JAX reference (replicates the PyTorch forward, eval-mode BN)
# --------------------------------------------------------------------------
def _conv_bn_relu_ref(x_nchw, p):
    y = lax.conv_general_dilated(
        x_nchw, p["w"], window_strides=(1, 1), padding=((1, 1), (1, 1)),
        dimension_numbers=("NCHW", "OIHW", "NCHW"))
    inv = p["gamma"] / jnp.sqrt(p["var"] + BN_EPS)
    y = y * inv[None, :, None, None] \
        + (p["beta"] - p["mean"] * inv)[None, :, None, None]
    return jnp.maximum(y, 0.0)


def _upsample2x_ref(x_nchw):
    B, C, H, W = x_nchw.shape
    H2, W2 = 2 * H, 2 * W
    sy = jnp.arange(H2, dtype=jnp.float32) * (H - 1) / (H2 - 1)
    sx = jnp.arange(W2, dtype=jnp.float32) * (W - 1) / (W2 - 1)
    y0 = jnp.clip(jnp.floor(sy).astype(jnp.int32), 0, H - 2)
    x0 = jnp.clip(jnp.floor(sx).astype(jnp.int32), 0, W - 2)
    fy = (sy - y0)[None, None, :, None]
    fx = (sx - x0)[None, None, None, :]
    top = x_nchw[:, :, y0, :] * (1.0 - fy) + x_nchw[:, :, y0 + 1, :] * fy
    return top[:, :, :, x0] * (1.0 - fx) + top[:, :, :, x0 + 1] * fx


def _decoder_cup_ref(hidden_states, params, config, features=None):
    B, n_patch, hidden = hidden_states.shape
    h = w = int(round(math.sqrt(n_patch)))
    x = jnp.transpose(hidden_states, (0, 2, 1)).reshape(B, hidden, h, w)
    x = _conv_bn_relu_ref(x, params["conv_more"])
    for i, blk in enumerate(params["blocks"]):
        x = _upsample2x_ref(x)
        skip = None
        if features is not None and i < config["n_skip"]:
            skip = features[i]
        if skip is not None:
            x = jnp.concatenate([x, skip], axis=1)
        x = _conv_bn_relu_ref(x, blk["conv1"])
        x = _conv_bn_relu_ref(x, blk["conv2"])
    return x


# --------------------------------------------------------------------------
# Parameter construction + test
# --------------------------------------------------------------------------
def _make_conv_bn_params(key, c_in, c_out):
    kw, kg, kb, km, kv = jax.random.split(key, 5)
    return {
        "w": 0.05 * jax.random.normal(kw, (c_out, c_in, 3, 3), jnp.float32),
        "gamma": 1.0 + 0.1 * jax.random.normal(kg, (c_out,), jnp.float32),
        "beta": 0.05 * jax.random.normal(kb, (c_out,), jnp.float32),
        "mean": 0.05 * jax.random.normal(km, (c_out,), jnp.float32),
        "var": 0.5 + jax.random.uniform(kv, (c_out,), jnp.float32),
    }


def _make_decoder_params(key, hidden, config):
    head = config["head_channels"]
    dec = list(config["decoder_channels"])
    in_chs = [head] + dec[:-1]
    if config["n_skip"] != 0:
        skips = list(config["skip_channels"])
        for i in range(4 - config["n_skip"]):
            skips[3 - i] = 0
    else:
        skips = [0, 0, 0, 0]
    keys = jax.random.split(key, 1 + 2 * len(dec))
    params = {"conv_more": _make_conv_bn_params(keys[0], hidden, head),
              "blocks": []}
    for i, (ic, oc, sk) in enumerate(zip(in_chs, dec, skips)):
        params["blocks"].append({
            "conv1": _make_conv_bn_params(keys[1 + 2 * i], ic + sk, oc),
            "conv2": _make_conv_bn_params(keys[2 + 2 * i], oc, oc),
        })
    return params


if __name__ == "__main__":
    # Small shapes consistent with the module: B=2, n_patch=16 (h=w=4), hidden=32.
    # head_channels is 512 in the real TransUNet config; scaled down here so the
    # example stays small -- semantics are identical.
    B, n_patch, hidden = 2, 16, 32
    config = {
        "head_channels": 64,
        "decoder_channels": (32, 16, 16, 8),
        "n_skip": 0,
        "skip_channels": [0, 0, 0, 0],
    }

    key = jax.random.PRNGKey(0)
    k_in, k_par = jax.random.split(key)
    hidden_states = jax.random.normal(k_in, (B, n_patch, hidden), jnp.float32)
    params = _make_decoder_params(k_par, hidden, config)

    out = decoder_cup_forward(hidden_states, params, config, features=None)
    out = jax.block_until_ready(out)

    ref = _decoder_cup_ref(hidden_states, params, config, features=None)
    side = int(round(math.sqrt(n_patch))) * (2 ** len(config["decoder_channels"]))
    assert out.shape == (B, config["decoder_channels"][-1], side, side), out.shape
    max_err = float(jnp.max(jnp.abs(out - ref)))
    assert max_err < 2e-3, max_err
    print("KERNEL_OK")
</pallas_src>

<mosaic_0001>
module attributes {stable_mosaic.version = 11 : i64} {
  func.func @_conv3x3_bn_relu_kernel(%arg0: i32, %arg1: memref<1x4x4x32xf32, #tpu.memory_space<vmem>>, %arg2: memref<9x32x64xf32, #tpu.memory_space<vmem>>, %arg3: memref<1x64xf32, #tpu.memory_space<vmem>>, %arg4: memref<1x16x64xf32, #tpu.memory_space<vmem>>, %arg5: memref<6x6x32xf32, #tpu.memory_space<vmem>>) attributes {dimension_semantics = [#tpu.dimension_semantics<parallel>], iteration_bounds = array<i64: 2>, scalar_prefetch = 0 : i64, scratch_operands = 1 : i64, tpu.core_type = #tpu.core_type<tc>, window_params = [{transform_indices = @transform_0, window_bounds = array<i64: 1, 4, 4, 32>}, {pipeline_mode = #tpu.pipeline_mode<synchronous>, transform_indices = @transform_1, window_bounds = array<i64: 9, 32, 64>}, {pipeline_mode = #tpu.pipeline_mode<synchronous>, transform_indices = @transform_2, window_bounds = array<i64: 1, 64>}, {transform_indices = @transform_3, window_bounds = array<i64: 1, 16, 64>}]} {
    %cst = arith.constant 0.000000e+00 : f32
    %0 = vector.broadcast %cst : f32 to vector<6x6x32xf32>
    %c0 = arith.constant 0 : index
    %c0_0 = arith.constant 0 : index
    %c0_1 = arith.constant 0 : index
    %1 = vector.load %arg5[%c0, %c0_0, %c0_1] : memref<6x6x32xf32, #tpu.memory_space<vmem>>, vector<6x6x32xf32>
    tpu.vector_store %arg5[%c0, %c0_0, %c0_1], %0 {strides = array<i32>} : memref<6x6x32xf32, #tpu.memory_space<vmem>>, vector<6x6x32xf32>,
    %c0_2 = arith.constant 0 : index
    %c0_3 = arith.constant 0 : index
    %c0_4 = arith.constant 0 : index
    %c0_5 = arith.constant 0 : index
    %2 = vector.load %arg1[%c0_2, %c0_3, %c0_4, %c0_5] : memref<1x4x4x32xf32, #tpu.memory_space<vmem>>, vector<1x4x4x32xf32>
    %3 = vector.shape_cast %2 : vector<1x4x4x32xf32> to vector<4x4x32xf32>
    %c1 = arith.constant 1 : index
    %c1_6 = arith.constant 1 : index
    %c0_7 = arith.constant 0 : index
    %4 = vector.load %arg5[%c1, %c1_6, %c0_7] : memref<6x6x32xf32, #tpu.memory_space<vmem>>, vector<4x4x32xf32>
    tpu.vector_store %arg5[%c1, %c1_6, %c0_7], %3 {strides = array<i32>} : memref<6x6x32xf32, #tpu.memory_space<vmem>>, vector<4x4x32xf32>,
    %cst_8 = arith.constant 0.000000e+00 : f32
    %5 = vector.broadcast %cst_8 : f32 to vector<16x64xf32>
    %c0_9 = arith.constant 0 : index
    %c0_10 = arith.constant 0 : index
    %c0_11 = arith.constant 0 : index
    %6 = vector.load %arg5[%c0_9, %c0_10, %c0_11] : memref<6x6x32xf32, #tpu.memory_space<vmem>>, vector<4x4x32xf32>
    %7 = vector.shape_cast %6 : vector<4x4x32xf32> to vector<16x32xf32>
    %c0_12 = arith.constant 0 : index
    %c0_13 = arith.constant 0 : index
    %c0_14 = arith.constant 0 : index
    %8 = vector.load %arg2[%c0_12, %c0_13, %c0_14] : memref<9x32x64xf32, #tpu.memory_space<vmem>>, vector<1x32x64xf32>
    %9 = vector.shape_cast %8 : vector<1x32x64xf32> to vector<32x64xf32>
    %cst_15 = arith.constant dense<0.000000e+00> : vector<16x64xf32>
    %10 = tpu.matmul %7, %9, %cst_15 {dimension_numbers = #tpu.dot_dimension_numbers<[1], [0], [0], [1], [0, 0, 1, 1], [], []>} : vector<16x32xf32>, vector<32x64xf32>, vector<16x64xf32> -> vector<16x64xf32>
    %11 = arith.addf %5, %10 : vector<16x64xf32>
    %c0_16 = arith.constant 0 : index
    %c1_17 = arith.constant 1 : index
    %c0_18 = arith.constant 0 : index
    %12 = vector.load %arg5[%c0_16, %c1_17, %c0_18] : memref<6x6x32xf32, #tpu.memory_space<vmem>>, vector<4x4x32xf32>
    %13 = vector.shape_cast %12 : vector<4x4x32xf32> to vector<16x32xf32>
    %c1_19 = arith.constant 1 : index
    %c0_20 = arith.constant 0 : index
    %c0_21 = arith.constant 0 : index
    %14 = vector.load %arg2[%c1_19, %c0_20, %c0_21] : memref<9x32x64xf32, #tpu.memory_space<vmem>>, vector<1x32x64xf32>
    %15 = vector.shape_cast %14 : vector<1x32x64xf32> to vector<32x64xf32>
    %cst_22 = arith.constant dense<0.000000e+00> : vector<16x64xf32>
    %16 = tpu.matmul %13, %15, %cst_22 {dimension_numbers = #tpu.dot_dimension_numbers<[1], [0], [0], [1], [0, 0, 1, 1], [], []>} : vector<16x32xf32>, vector<32x64xf32>, vector<16x64xf32> -> vector<16x64xf32>
    %17 = arith.addf %11, %16 : vector<16x64xf32>
    %c0_23 = arith.constant 0 : index
    %c2 = arith.constant 2 : index
    %c0_24 = arith.constant 0 : index
    %18 = vector.load %arg5[%c0_23, %c2, %c0_24] : memref<6x6x32xf32, #tpu.memory_space<vmem>>, vector<4x4x32xf32>
    %19 = vector.shape_cast %18 : vector<4x4x32xf32> to vector<16x32xf32>
    %c2_25 = arith.constant 2 : index
    %c0_26 = arith.constant 0 : index
    %c0_27 = arith.constant 0 : index
    %20 = vector.load %arg2[%c2_25, %c0_26, %c0_27] : memref<9x32x64xf32, #tpu.memory_space<vmem>>, vector<1x32x64xf32>
    %21 = vector.shape_cast %20 : vector<1x32x64xf32> to vector<32x64xf32>
    %cst_28 = arith.constant dense<0.000000e+00> : vector<16x64xf32>
    %22 = tpu.matmul %19, %21, %cst_28 {dimension_numbers = #tpu.dot_dimension_numbers<[1], [0], [0], [1], [0, 0, 1, 1], [], []>} : vector<16x32xf32>, vector<32x64xf32>, vector<16x64xf32> -> vector<16x64xf32>
    %23 = arith.addf %17, %22 : vector<16x64xf32>
    %c1_29 = arith.constant 1 : index
    %c0_30 = arith.constant 0 : index
    %c0_31 = arith.constant 0 : index
    %24 = vector.load %arg5[%c1_29, %c0_30, %c0_31] : memref<6x6x32xf32, #tpu.memory_space<vmem>>, vector<4x4x32xf32>
    %25 = vector.shape_cast %24 : vector<4x4x32xf32> to vector<16x32xf32>
    %c3 = arith.constant 3 : index
    %c0_32 = arith.constant 0 : index
    %c0_33 = arith.constant 0 : index
    %26 = vector.load %arg2[%c3, %c0_32, %c0_33] : memref<9x32x64xf32, #tpu.memory_space<vmem>>, vector<1x32x64xf32>
    %27 = vector.shape_cast %26 : vector<1x32x64xf32> to vector<32x64xf32>
    %cst_34 = arith.constant dense<0.000000e+00> : vector<16x64xf32>
    %28 = tpu.matmul %25, %27, %cst_34 {dimension_numbers = #tpu.dot_dimension_numbers<[1], [0], [0], [1], [0, 0, 1, 1], [], []>} : vector<16x32xf32>, vector<32x64xf32>, vector<16x64xf32> -> vector<16x64xf32>
    %29 = arith.addf %23, %28 : vector<16x64xf32>
    %c1_35 = arith.constant 1 : index
    %c1_36 = arith.constant 1 : index
    %c0_37 = arith.constant 0 : index
    %30 = vector.load %arg5[%c1_35, %c1_36, %c0_37] : memref<6x6x32xf32, #tpu.memory_space<vmem>>, vector<4x4x32xf32>
    %31 = vector.shape_cast %30 : vector<4x4x32xf32> to vector<16x32xf32>
    %c4 = arith.constant 4 : index
    %c0_38 = arith.constant 0 : index
    %c0_39 = arith.constant 0 : index
    %32 = vector.load %arg2[%c4, %c0_38, %c0_39] : memref<9x32x64xf32, #tpu.memory_space<vmem>>, vector<1x32x64xf32>
    %33 = vector.shape_cast %32 : vector<1x32x64xf32> to vector<32x64xf32>
    %cst_40 = arith.constant dense<0.000000e+00> : vector<16x64xf32>
    %34 = tpu.matmul %31, %33, %cst_40 {dimension_numbers = #tpu.dot_dimension_numbers<[1], [0], [0], [1], [0, 0, 1, 1], [], []>} : vector<16x32xf32>, vector<32x64xf32>, vector<16x64xf32> -> vector<16x64xf32>
    %35 = arith.addf %29, %34 : vector<16x64xf32>
    %c1_41 = arith.constant 1 : index
    %c2_42 = arith.constant 2 : index
    %c0_43 = arith.constant 0 : index
    %36 = vector.load %arg5[%c1_41, %c2_42, %c0_43] : memref<6x6x32xf32, #tpu.memory_space<vmem>>, vector<4x4x32xf32>
    %37 = vector.shape_cast %36 : vector<4x4x32xf32> to vector<16x32xf32>
    %c5 = arith.constant 5 : index
    %c0_44 = arith.constant 0 : index
    %c0_45 = arith.constant 0 : index
    %38 = vector.load %arg2[%c5, %c0_44, %c0_45] : memref<9x32x64xf32, #tpu.memory_space<vmem>>, vector<1x32x64xf32>
    %39 = vector.shape_cast %38 : vector<1x32x64xf32> to vector<32x64xf32>
    %cst_46 = arith.constant dense<0.000000e+00> : vector<16x64xf32>
    %40 = tpu.matmul %37, %39, %cst_46 {dimension_numbers = #tpu.dot_dimension_numbers<[1], [0], [0], [1], [0, 0, 1, 1], [], []>} : vector<16x32xf32>, vector<32x64xf32>, vector<16x64xf32> -> vector<16x64xf32>
    %41 = arith.addf %35, %40 : vector<16x64xf32>
    %c2_47 = arith.constant 2 : index
    %c0_48 = arith.constant 0 : index
    %c0_49 = arith.constant 0 : index
    %42 = vector.load %arg5[%c2_47, %c0_48, %c0_49] : memref<6x6x32xf32, #tpu.memory_space<vmem>>, vector<4x4x32xf32>
    %43 = vector.shape_cast %42 : vector<4x4x32xf32> to vector<16x32xf32>
    %c6 = arith.constant 6 : index
    %c0_50 = arith.constant 0 : index
    %c0_51 = arith.constant 0 : index
    %44 = vector.load %arg2[%c6, %c0_50, %c0_51] : memref<9x32x64xf32, #tpu.memory_space<vmem>>, vector<1x32x64xf32>
    %45 = vector.shape_cast %44 : vector<1x32x64xf32> to vector<32x64xf32>
    %cst_52 = arith.constant dense<0.000000e+00> : vector<16x64xf32>
    %46 = tpu.matmul %43, %45, %cst_52 {dimension_numbers = #tpu.dot_dimension_numbers<[1], [0], [0], [1], [0, 0, 1, 1], [], []>} : vector<16x32xf32>, vector<32x64xf32>, vector<16x64xf32> -> vector<16x64xf32>
    %47 = arith.addf %41, %46 : vector<16x64xf32>
    %c2_53 = arith.constant 2 : index
    %c1_54 = arith.constant 1 : index
    %c0_55 = arith.constant 0 : index
    %48 = vector.load %arg5[%c2_53, %c1_54, %c0_55] : memref<6x6x32xf32, #tpu.memory_space<vmem>>, vector<4x4x32xf32>
    %49 = vector.shape_cast %48 : vector<4x4x32xf32> to vector<16x32xf32>
    %c7 = arith.constant 7 : index
    %c0_56 = arith.constant 0 : index
    %c0_57 = arith.constant 0 : index
    %50 = vector.load %arg2[%c7, %c0_56, %c0_57] : memref<9x32x64xf32, #tpu.memory_space<vmem>>, vector<1x32x64xf32>
    %51 = vector.shape_cast %50 : vector<1x32x64xf32> to vector<32x64xf32>
    %cst_58 = arith.constant dense<0.000000e+00> : vector<16x64xf32>
    %52 = tpu.matmul %49, %51, %cst_58 {dimension_numbers = #tpu.dot_dimension_numbers<[1], [0], [0], [1], [0, 0, 1, 1], [], []>} : vector<16x32xf32>, vector<32x64xf32>, vector<16x64xf32> -> vector<16x64xf32>
    %53 = arith.addf %47, %52 : vector<16x64xf32>
    %c2_59 = arith.constant 2 : index
    %c2_60 = arith.constant 2 : index
    %c0_61 = arith.constant 0 : index
    %54 = vector.load %arg5[%c2_59, %c2_60, %c0_61] : memref<6x6x32xf32, #tpu.memory_space<vmem>>, vector<4x4x32xf32>
    %55 = vector.shape_cast %54 : vector<4x4x32xf32> to vector<16x32xf32>
    %c8 = arith.constant 8 : index
    %c0_62 = arith.constant 0 : index
    %c0_63 = arith.constant 0 : index
    %56 = vector.load %arg2[%c8, %c0_62, %c0_63] : memref<9x32x64xf32, #tpu.memory_space<vmem>>, vector<1x32x64xf32>
    %57 = vector.shape_cast %56 : vector<1x32x64xf32> to vector<32x64xf32>
    %cst_64 = arith.constant dense<0.000000e+00> : vector<16x64xf32>
    %58 = tpu.matmul %55, %57, %cst_64 {dimension_numbers = #tpu.dot_dimension_numbers<[1], [0], [0], [1], [0, 0, 1, 1], [], []>} : vector<16x32xf32>, vector<32x64xf32>, vector<16x64xf32> -> vector<16x64xf32>
    %59 = arith.addf %53, %58 : vector<16x64xf32>
    %c0_65 = arith.constant 0 : index
    %c0_66 = arith.constant 0 : index
    %60 = vector.load %arg3[%c0_65, %c0_66] : memref<1x64xf32, #tpu.memory_space<vmem>>, vector<1x64xf32>
    %61 = vector.broadcast %60 : vector<1x64xf32> to vector<16x64xf32>
    %62 = arith.addf %59, %61 : vector<16x64xf32>
    %cst_67 = arith.constant 0.000000e+00 : f32
    %63 = vector.broadcast %cst_67 : f32 to vector<16x64xf32>
    %64 = arith.maximumf %62, %63 : vector<16x64xf32>
    %c0_68 = arith.constant 0 : index
    %c0_69 = arith.constant 0 : index
    %c0_70 = arith.constant 0 : index
    %65 = vector.load %arg4[%c0_68, %c0_69, %c0_70] : memref<1x16x64xf32, #tpu.memory_space<vmem>>, vector<1x16x64xf32>
    %66 = vector.shape_cast %65 : vector<1x16x64xf32> to vector<16x64xf32>
    %67 = vector.shape_cast %64 : vector<16x64xf32> to vector<1x16x64xf32>
    tpu.vector_store %arg4[%c0_68, %c0_69, %c0_70], %67 {strides = array<i32>} : memref<1x16x64xf32, #tpu.memory_space<vmem>>, vector<1x16x64xf32>,
    return
  }
  func.func @transform_0(%arg0: i32) -> (i32, i32, i32, i32) {
    %c0_i32 = arith.constant 0 : i32
    %c0_i32_0 = arith.constant 0 : i32
    %c0_i32_1 = arith.constant 0 : i32
    %c0_i32_2 = arith.constant 0 : i32
    return %arg0, %c0_i32, %c0_i32_0, %c0_i32_1 : i32, i32, i32, i32
  }
  func.func @transform_1(%arg0: i32) -> (i32, i32, i32) {
    %c0_i32 = arith.constant 0 : i32
    %c0_i32_0 = arith.constant 0 : i32
    %c0_i32_1 = arith.constant 0 : i32
    %c0_i32_2 = arith.constant 0 : i32
    return %c0_i32, %c0_i32_0, %c0_i32_1 : i32, i32, i32
  }
  func.func @transform_2(%arg0: i32) -> (i32, i32) {
    %c0_i32 = arith.constant 0 : i32
    %c0_i32_0 = arith.constant 0 : i32
    %c0_i32_1 = arith.constant 0 : i32
    return %c0_i32, %c0_i32_0 : i32, i32
  }
  func.func @transform_3(%arg0: i32) -> (i32, i32, i32) {
    %c0_i32 = arith.constant 0 : i32
    %c0_i32_0 = arith.constant 0 : i32
    %c0_i32_1 = arith.constant 0 : i32
    return %arg0, %c0_i32, %c0_i32_0 : i32, i32, i32
  }
}

</mosaic_0001>

<bundles_post_ra>
// kernel: tpu_custom_call.1
= control target key start
LH: loop header
LB: loop body
LE: loop exit
PB: predicated region body
PF: predicated region fallthrough
CT: control target
= control target key end

     0   :  { %8 = vsyncpa [#allocation4], 0  ;;  %s1231_s0 = inlined_call_operand.hbm [shape: f32[2,4,4,32], index: 0, kind: input, shape index: {}]   ;;  %s1232_s1 = inlined_call_operand.hbm [shape: f32[9,32,64], index: 1, kind: input, shape index: {}]   ;;  %s1233_s2 = inlined_call_operand.vmem [shape: f32[1,64], index: 2, kind: input, shape index: {}]   ;;  %s1234_s3 = inlined_call_operand.hbm [shape: f32[2,16,64], index: 3, kind: output, shape index: {}]  }
   0x1   :  { %10 = vsyncpa [#allocation4 + $0x1], 0 }
   0x2   :  { %11 = vsyncpa [#allocation7], 0 }
   0x3   :  { %12 = vsyncpa [#allocation5], 0 }
   0x4   :  { %14 = vsyncpa [#allocation5 + $0x1], 0  ;;  %s1056_s12 = smov 0   ;;  %s1058_s13 = smov 0  }
   0x5   :  { %s1060_s14 = smov 0   ;;  %s1062_s15 = smov 0  }
   0x6 LB: > { %s1077_s16 = sadd.s32 4294967295, %s1026_s15   ;;  %s791_s17 = sadd.s32 4294967294, %s1026_s15   ;;  %s1026_s15 = sphi %s1062_s15, %s1244_s15   ;;  %s1022_s14 = sphi %s1060_s14, %s1243_s14   ;;  %s1018_s13 = sphi %s1058_s13, %s1242_s13   ;;  %s1014_s12 = sphi %s1056_s12, %s1241_s12  }
   0x7   : > { %p40_p0 = scmp.ne.s32.totalorder %s1018_s13, %s1014_s12  ;;  %p41_p1 = scmp.eq.s32.totalorder %s1077_s16, 0 }
   0x8   : > { %p106_p2 = scmp.eq.s32.totalorder %s1077_s16, 1  ;;  %p112_p3 = scmp.eq.s32.totalorder %s791_s17, 1 }
   0x9   : > { %p1086_p4 = por %p41_p1, %p40_p0  ;;  %p792_p5 = scmp.ge.s32.totalorder %s1026_s15, 1 }
   0xa   : > { %p1091_p6 = por %p112_p3, %p40_p0  ;;  %p119_p7 = scmp.lt.s32.totalorder %s1026_s15, 3 }
   0xb   : > { %s130_s22 = sshll.u32 %s1232_s1, 4  ;;  %s1028_s24 = smov [#allocation6]   ;;  %s131_s22 = int_to_ptr.hbm [resolvable:$true] %s130_s22 }
   0xc   : > { %p1099_p8 = pnand %p792_p5, %p119_p7  ;;  %s132_s25 = sshll.u32 %s1028_s24, 4  ;;  %s133_s25 = int_to_ptr.vmem [resolvable:$true] %s132_s25 }
   0xd   : > { %s1109_s26 = sadd.s32 1, %s1026_s15   ;;  %s1029_s27 = smov 128  }
   0xe   : > { %p839_p9 = pneg %p1099_p8  ;;  %s1030_s28 = smov 8  }
   0xf   : > { %s24_s29 = ssub.s32 %s1026_s15, %s1109_s26  ;;  %s27_s30 = sadd.s32 1, %s1022_s14 }
  0x10   : > { %p840_p10 = pnand %p839_p9, %p41_p1  ;;  %p25_p12 = scmp.eq.s32.totalorder %s24_s29, 0 }
  0x11   : > { %p34_p13 = scmp.ne.s32.totalorder %s1022_s14, %s1018_s13  ;;  %p35_p0 = scmp.eq.s32.totalorder %s1026_s15, 0 }
  0x12   : > { %842 = dma.hbm_to_vmem [thread:$0]  (!%p840_p10), %s131_s22, 4608, %s133_s25, [#allocation7], %s1029_s27, %s1029_s27, %s1030_s28  }
  0x13   : > { %p852_p3 = scmp.lt.s32.totalorder %s1026_s15, 2  ;;  %p36_p5 = por %p35_p0, %p34_p13 }
  0x14   : > { %s1119_s4 = scalar_select %p25_p12, %s1022_s14, %s27_s30  }
  0x15   : > { %p1123_p7 = por %p106_p2, %p34_p13  ;;  %s149_s6 = sand.u32 1, %s1022_s14  }
  0x16   : > { %s825_s7 = sshll.u32 %s1026_s15, 4  ;;  %s795_s8 = sshll.u32 %s149_s6, 4 }
  0x17   : > { %s158_s11 = scalar_lea.hbm %s1231_s0, %s825_s7  ;;  %s153_s20 = scalar_lea.vmem [#allocation3], %s795_s8 }
  0x18   : > { %s159_s17 = sshll.u32 %s158_s11, 4  ;;  %s161_s21 = sshll.u32 %s153_s20, 4  ;;  %s160_s17 = int_to_ptr.hbm [resolvable:$true] %s159_s17  ;;  %s162_s21 = int_to_ptr.vmem [resolvable:$true] %s161_s21 }
  0x19   : > { %p1134_p9 = pnand %p852_p3, %p36_p5  ;;  %s150_s24 = scalar_lea.sflag [#allocation4], %s149_s6 }
  0x1a   : > { %s926_s25 = sshra.s32 %s160_s17, 4  ;;  %s933_s30 = scalar_lea.hbm %s1231_s0, 32  ;;  %s927_s25 = int_to_ptr.hbm [resolvable:$true] %s926_s25 }
  0x1b   : > { %s928_s27 = scalar_lea.hbm %s927_s25, 16  ;;  %p930_p10 = pneg %p1134_p9 }
  0x1c   : > { %p929_p2 = scmp.ne.s32.totalorder %s927_s25, %s928_s27  ;;  %p934_p0 = scmp.lt.s32.totalorder %s927_s25, %s1231_s0 }
  0x1d   : > { %p935_p3 = scmp.lt.s32.totalorder %s933_s30, %s928_s27 }
  0x1e   : > { %p931_p12 = pnand %p930_p10, %p929_p2 }
  0x1f   : > { %p936_p5 = por %p935_p3, %p934_p0 }
  0x20   : > { %p932_p13 = pneg %p931_p12 }
  0x22   : > { %p937_p11 = pnand %p936_p5, %p932_p13 }
  0x24   : > { %940 = shalt.err (!%p937_p11)
}
  0x25   : > { %s1031_s6 = smov 64   ;;  %s1032_s9 = smov 4  }
  0x26   : > { %846 = dma.hbm_to_vmem [thread:$0]  (!%p1134_p9), %s160_s17, 256, %s162_s21, %s150_s24, %s1031_s6, %s1031_s6, %s1032_s9  }
  0x27   : > { %173 = sbr.rel (%p1099_p8) target bundleno = 289 (0x121), region = 32  ;;  %s1151_s10 = sand.u32 (!%p1099_p8), 1, %s1018_s13  }
  0x28   : > { %s799_s11 = sshll.u32 (!%p1099_p8), %s1151_s10, 4  ;;  %s176_s20 = scalar_lea.sflag (!%p1099_p8), [#allocation4], %s1151_s10 }
  0x29   : > { %s1157_s25 = scalar_lea.vmem (!%p1099_p8), [#allocation3], %s799_s11 }
  0x2c   : > { %1001 = dma.done.wait (%p1086_p4), %s176_s20, 256  }
  0x2d   : > { %1003 = vsyncadd (%p1086_p4), %s176_s20, 4294967040 }
  0x2e   : > { %1005 = dma.done.wait (%p41_p1), [#allocation7], 4608  }
  0x2f   : > { %1007 = vsyncadd (%p41_p1), [#allocation7], 4294962688  ;;  %vm208_vm0 = vcmask 259072   ;;  %v1033_v0 = vmov 0.0   ;;  %v241_v1 = vld [vmem:[#allocation6 + $0x38] sm:$0xff]  ;;  %v240_v2 = vld [vmem:[#allocation6 + $0x30] sm:$0xff] }
  0x30   : > { %211 = vst.msk [vmem:[#allocation2 + $0x10] sm:$0x3f] %vm208_vm0, %v1033_v0  ;;  %827 = vmatpush.msra.mxu1 %v241_v1  ;;  %v331_v3 = vld [vmem:[#allocation6 + $0x58] sm:$0xff]  ;;  %v216_v4 = vld [vmem:[%s1157_s25 + $0x4] sm:$0xf]  ;;  %vm220_vm1 = vcmask 257024   ;;  %272 = vmatpush.msra.mxu0 %v241_v1 }
  0x31   : > { %212 = vst.msk [vmem:[#allocation2 + $0x18] sm:$0x3f] %vm208_vm0, %v1033_v0  ;;  %v239_v5 = vld [vmem:[#allocation6 + $0x28] sm:$0xff]  ;;  %361 = vmatpush.msra.mxu2 %v331_v3  ;;  %v330_v7 = vld [vmem:[#allocation6 + $0x50] sm:$0xff]  ;;  %v382_v8 = vld [vmem:[#allocation6 + $0x78] sm:$0xff]  ;;  %vm255_vm2 = vcmask 261120  }
  0x32   : > { %209 = vst.msk [vmem:[#allocation2] sm:$0x3f] %vm208_vm0, %v1033_v0  ;;  %v217_v6 = vld [vmem:[%s1157_s25 + $0x8] sm:$0xf]  ;;  %828 = vmatpush.msra.mxu1 %v240_v2  ;;  %273 = vmatpush.msra.mxu0 %v240_v2  ;;  %v238_v10 = vld [vmem:[#allocation6 + $0x20] sm:$0xff]  ;;  %v381_v11 = vld [vmem:[#allocation6 + $0x70] sm:$0xff] }
  0x33   : > { %210 = vst.msk [vmem:[#allocation2 + $0x8] sm:$0x3f] %vm208_vm0, %v1033_v0  ;;  %v329_v9 = vld [vmem:[#allocation6 + $0x48] sm:$0xff]  ;;  %362 = vmatpush.msra.mxu2 %v330_v7  ;;  %412 = vmatpush.msra.mxu3 %v382_v8  ;;  %v232_v12 = vld [vmem:[#allocation6 + $0x18] sm:$0xff]  ;;  %v328_v13 = vld [vmem:[#allocation6 + $0x40] sm:$0xff]  ;;  %s826_s17 = sshll.u32 %s1077_s16, 4 }
  0x34   : > { %213 = vst.msk [vmem:[#allocation2 + $0x20] sm:$0x3f] %vm208_vm0, %v1033_v0  ;;  %829 = vmatpush.msra.mxu1 %v239_v5  ;;  %274 = vmatpush.msra.mxu0 %v239_v5  ;;  %v215_v14 = vld [vmem:[%s1157_s25] sm:$0xf]  ;;  %v380_v15 = vld [vmem:[#allocation6 + $0x68] sm:$0xff]  ;;  %v433_v26 = vld [vmem:[#allocation6 + $0x98] sm:$0xff]  ;;  %s704_s24 = scalar_lea.hbm %s1234_s3, %s826_s17 }
  0x35   : > { %214 = vst.msk [vmem:[#allocation2 + $0x28] sm:$0x3f] %vm208_vm0, %v1033_v0  ;;  %363 = vmatpush.msra.mxu2 %v329_v9  ;;  %413 = vmatpush.msra.mxu3 %v381_v11  ;;  %v231_v17 = vld [vmem:[#allocation6 + $0x10] sm:$0xff]  ;;  %v379_v18 = vld [vmem:[#allocation6 + $0x60] sm:$0xff]  ;;  %v230_v20 = vld [vmem:[#allocation6 + $0x8] sm:$0xff]  ;;  %vm689_vm3 = vcmask 523264  }
  0x36   : > { %222 = vst.msk [vmem:[#allocation2 + $0x11] sm:$0xf] %vm220_vm1, %v216_v4  ;;  %830 = vmatpush.msra.mxu1 %v238_v10  ;;  %275 = vmatpush.msra.mxu0 %v238_v10  ;;  %v218_v21 = vld [vmem:[%s1157_s25 + $0xc] sm:$0xf]  ;;  %v229_v23 = vld [vmem:[#allocation6] sm:$0xff]  ;;  %v432_v27 = vld [vmem:[#allocation6 + $0x90] sm:$0xff] }
  0x37   : > { %223 = vst.msk [vmem:[#allocation2 + $0x19] sm:$0xf] %vm220_vm1, %v217_v6  ;;  %364 = vmatpush.msra.mxu2 %v328_v13  ;;  %414 = vmatpush.msra.mxu3 %v380_v15  ;;  %v431_v32 = vld [vmem:[#allocation6 + $0x88] sm:$0xff]  ;;  %v430_v34 = vld [vmem:[#allocation6 + $0x80] sm:$0xff]  ;;  %v484_v38 = vld [vmem:[#allocation6 + $0xb8] sm:$0xff]  ;;  %s207_s27 = scalar_lea.vmem [#allocation8], %s799_s11 }
  0x38   : > { %221 = vst.msk [vmem:[#allocation2 + $0x9] sm:$0xf] %vm220_vm1, %v215_v14  ;;  %312 = vmatpush.msrb.mxu1 %v232_v12  ;;  %463 = vmatpush.msrb.mxu0 %v433_v26  ;;  %v483_v39 = vld [vmem:[#allocation6 + $0xb0] sm:$0xff]  ;;  %v536_v41 = vld [vmem:[#allocation6 + $0xd8] sm:$0xff]  ;;  %v482_v43 = vld [vmem:[#allocation6 + $0xa8] sm:$0xff]  ;;  %s705_s28 = sshll.u32 %s207_s27, 4  ;;  %s706_s28 = int_to_ptr.vmem [resolvable:$true] %s705_s28 }
  0x39   : > { %v233_v16 = vld [vmem:[#allocation2 + $0x1] sm:$0xf]  ;;  %415 = vmatpush.msra.mxu3 %v379_v18  ;;  %224 = vst.msk [vmem:[#allocation2 + $0x21] sm:$0xf] %vm220_vm1, %v218_v21  ;;  %566 = vmatpush.msrb.mxu2 %v536_v41  ;;  %v481_v45 = vld [vmem:[#allocation6 + $0xa0] sm:$0xff]  ;;  %v587_v49 = vld [vmem:[#allocation6 + $0xf8] sm:$0xff] }
  0x3a   : > { %246 = vst [vmem:[#allocation1] ss:$2 sm:$0xff] %v233_v16  ;;  %313 = vmatpush.msrb.mxu1 %v231_v17  ;;  %v225_v30 = vld [vmem:[#allocation2] sm:$0xf]  ;;  %464 = vmatpush.msrb.mxu0 %v432_v27  ;;  %v534_v54 = vld [vmem:[#allocation6 + $0xc8] sm:$0xff]  ;;  %v533_v56 = vld [vmem:[#allocation6 + $0xc0] sm:$0xff] }
  0x3b   : > { %v323_v40 = vld [vmem:[#allocation2 + $0x2] sm:$0xf]  ;;  %617 = vmatpush.msrb.mxu3 %v587_v49  ;;  %v585_v60 = vld [vmem:[#allocation6 + $0xe8] sm:$0xff]  ;;  %v638_v61 = vld [vmem:[#allocation6 + $0x118] sm:$0xff]  ;;  %s707_s29 = sshll.u32 %s704_s24, 4  ;;  %s693_s16 = scalar_lea.sflag [#allocation5], %s1151_s10  ;;  %s708_s29 = int_to_ptr.hbm [resolvable:$true] %s707_s29 }
  0x3c   : > { %314 = vmatpush.msrb.mxu1 %v230_v20  ;;  %465 = vmatpush.msrb.mxu0 %v431_v32  ;;  %v535_v50 = vld [vmem:[#allocation6 + $0xd0] sm:$0xff]  ;;  %v584_v63 = vld [vmem:[#allocation6 + $0xe0] sm:$0xff]  ;;  %v636_v6 = vld [vmem:[#allocation6 + $0x108] sm:$0xff]  ;;  %s970_s30 = sshra.s32 %s708_s29, 4  ;;  %s976_s9 = scalar_lea.hbm %s1234_s3, 32  ;;  %s971_s30 = int_to_ptr.hbm [resolvable:$true] %s970_s30 }
  0x3d   : > { %v235_v19 = vld [vmem:[#allocation2 + $0x11] sm:$0xf]  ;;  %567 = vmatpush.msrb.mxu2 %v535_v50  ;;  %v586_v52 = vld [vmem:[#allocation6 + $0xf0] sm:$0xff]  ;;  %v531_v12 = vld [vmem:[#allocation2 + $0x28] sm:$0xf]  ;;  %s972_s7 = scalar_lea.hbm %s971_s30, 16  ;;  %p977_p11 = scmp.lt.s32.totalorder %s971_s30, %s1234_s3 }
  0x3e   : > { %v236_v22 = vld [vmem:[#allocation2 + $0x19] sm:$0xf]  ;;  %250 = vst [vmem:[#allocation1 + $0x10] ss:$2 sm:$0xff] %v235_v19  ;;  %315 = vmatpush.msrb.mxu1 %v229_v23  ;;  %v227_v25 = vld [vmem:[#allocation2 + $0x10] sm:$0xf]  ;;  %466 = vmatpush.msrb.mxu0 %v430_v34  ;;  %p973_p1 = scmp.ne.s32.totalorder %s971_s30, %s972_s7  ;;  %p978_p9 = scmp.lt.s32.totalorder %s976_s9, %s972_s7 }
  0x3f   : > { %252 = vst [vmem:[#allocation1 + $0x11] ss:$2 sm:$0xff] %v236_v22  ;;  %v234_v24 = vld [vmem:[#allocation2 + $0x9] sm:$0xf]  ;;  %v228_v28 = vld [vmem:[#allocation2 + $0x18] sm:$0xf]  ;;  %618 = vmatpush.msrb.mxu3 %v586_v52  ;;  %568 = vmatpush.msrb.mxu2 %v534_v54 }
  0x40   : > { %248 = vst [vmem:[#allocation1 + $0x1] ss:$2 sm:$0xff] %v234_v24  ;;  %v226_v31 = vld [vmem:[#allocation2 + $0x8] sm:$0xf]  ;;  %v325_v35 = vld [vmem:[#allocation2 + $0x12] sm:$0xf]  ;;  %p974_p4 = pnand %p973_p1, %p1123_p7  ;;  %p979_p2 = por %p978_p9, %p977_p11 }
  0x41   : > { %v326_v36 = vld [vmem:[#allocation2 + $0x1a] sm:$0xf]  ;;  %v324_v42 = vld [vmem:[#allocation2 + $0xa] sm:$0xf]  ;;  %v377_v47 = vld [vmem:[#allocation2 + $0x20] sm:$0xf]  ;;  %569 = vmatpush.msrb.mxu2 %v533_v56  ;;  %619 = vmatpush.msrb.mxu3 %v585_v60 }
  0x42   : > { %v376_v46 = vld [vmem:[#allocation2 + $0x18] sm:$0xf]  ;;  %v374_v51 = vld [vmem:[#allocation2 + $0x8] sm:$0xf]  ;;  %v375_v53 = vld [vmem:[#allocation2 + $0x10] sm:$0xf]  ;;  %p975_p8 = pneg %p974_p4 }
  0x43   : > { %v427_v57 = vld [vmem:[#allocation2 + $0x19] sm:$0xf]  ;;  %v428_v58 = vld [vmem:[#allocation2 + $0x21] sm:$0xf]  ;;  %v425_v62 = vld [vmem:[#allocation2 + $0x9] sm:$0xf]  ;;  %620 = vmatpush.msrb.mxu3 %v584_v63 }
  0x44   : > { %v637_v0 = vld [vmem:[#allocation6 + $0x110] sm:$0xff]  ;;  %v426_v1 = vld [vmem:[#allocation2 + $0x11] sm:$0xf]  ;;  %v478_v3 = vld [vmem:[#allocation2 + $0x1a] sm:$0xf]  ;;  %p980_p10 = pnand %p979_p2, %p975_p8 }
  0x45   : > { %v479_v4 = vld [vmem:[#allocation2 + $0x22] sm:$0xf]  ;;  %v635_v7 = vld [vmem:[#allocation6 + $0x100] sm:$0xff]  ;;  %v476_v8 = vld [vmem:[#allocation2 + $0xa] sm:$0xf] }
  0x46   : > { %v254_v29 = vld.sshfl [vmem:[#allocation1 + $0x10] sm:$0xff pattern:$0x75316420]  ;;  %v477_v9 = vld [vmem:[#allocation2 + $0x12] sm:$0xf] }
  0x47   : > { %803 = vmatmul.msk.f32.vlgmr.msra.gmra.mxu1 %vm255_vm2, %v254_v29  ;;  %291 = vst [vmem:[#allocation1 + $0x10] ss:$2 sm:$0xff] %v227_v25  ;;  %v253_v33 = vld.sshfl [vmem:[#allocation1] sm:$0xff pattern:$0x75316420] }
  0x48   : > { %293 = vst [vmem:[#allocation1 + $0x11] ss:$2 sm:$0xff] %v228_v28  ;;  %802 = vmatmul.msk.f32.vlgmr.msra.gmra.mxu0 %vm255_vm2, %v253_v33  ;;  %514 = vmatpush.msra.mxu1 %v484_v38  ;;  %v530_v11 = vld [vmem:[#allocation2 + $0x20] sm:$0xf]  ;;  %v528_v14 = vld [vmem:[#allocation2 + $0x10] sm:$0xf] }
  0x49   : > { %287 = vst [vmem:[#allocation1] ss:$2 sm:$0xff] %v225_v30  ;;  %668 = vmatpush.msra.mxu0 %v638_v61  ;;  %v529_v15 = vld [vmem:[#allocation2 + $0x18] sm:$0xf]  ;;  %v581_v17 = vld [vmem:[#allocation2 + $0x21] sm:$0xf] }
  0x4a   : > { %289 = vst [vmem:[#allocation1 + $0x1] ss:$2 sm:$0xff] %v226_v31  ;;  %515 = vmatpush.msra.mxu1 %v483_v39  ;;  %v582_v18 = vld [vmem:[#allocation2 + $0x29] sm:$0xf]  ;;  %v579_v20 = vld [vmem:[#allocation2 + $0x11] sm:$0xf] }
  0x4b   : > { %669 = vmatpush.msra.mxu0 %v637_v0  ;;  %v580_v21 = vld [vmem:[#allocation2 + $0x19] sm:$0xf]  ;;  %v632_v23 = vld [vmem:[#allocation2 + $0x22] sm:$0xf]  ;;  %v633_v24 = vld [vmem:[#allocation2 + $0x2a] sm:$0xf] }
  0x4c   : > { %516 = vmatpush.msra.mxu1 %v482_v43  ;;  %v630_v26 = vld [vmem:[#allocation2 + $0x12] sm:$0xf]  ;;  %v631_v27 = vld [vmem:[#allocation2 + $0x1a] sm:$0xf] }
  0x4d   : > { %670 = vmatpush.msra.mxu0 %v636_v6 }
  0x4e   : > { %517 = vmatpush.msra.mxu1 %v481_v45 }
  0x4f   : > { %v295_v37 = vld.sshfl [vmem:[#allocation1 + $0x10] sm:$0xff pattern:$0x75316420]  ;;  %671 = vmatpush.msra.mxu0 %v635_v7 }
  0x50   : > { %340 = vst [vmem:[#allocation1 + $0x10] ss:$2 sm:$0xff] %v325_v35 }
  0x51   : > { %342 = vst [vmem:[#allocation1 + $0x11] ss:$2 sm:$0xff] %v326_v36  ;;  %v294_v44 = vld.sshfl [vmem:[#allocation1] sm:$0xff pattern:$0x75316420] }
  0x52   : > { %336 = vst [vmem:[#allocation1] ss:$2 sm:$0xff] %v323_v40  ;;  %804 = vmatmul.msk.f32.vlgmr.msrb.gmra.mxu1 %vm255_vm2, %v294_v44 }
  0x53   : > { %338 = vst [vmem:[#allocation1 + $0x1] ss:$2 sm:$0xff] %v324_v42 }
  0x58   : > { %v344_v48 = vld.sshfl [vmem:[#allocation1 + $0x10] sm:$0xff pattern:$0x75316420] }
  0x59   : > { %391 = vst [vmem:[#allocation1 + $0x10] ss:$2 sm:$0xff] %v376_v46 }
  0x5a   : > { %393 = vst [vmem:[#allocation1 + $0x11] ss:$2 sm:$0xff] %v377_v47  ;;  %v343_v55 = vld.sshfl [vmem:[#allocation1] sm:$0xff pattern:$0x75316420]  ;;  %805 = vmatmul.msk.f32.gmra.mxu1 %vm255_vm2, %v295_v37 }
  0x5b   : > { %806 = vmatmul.msk.f32.vlgmr.msra.gmra.mxu2 %vm255_vm2, %v343_v55  ;;  %387 = vst [vmem:[#allocation1] ss:$2 sm:$0xff] %v374_v51  ;;  %v895_v55 = vld [vmem:[%s1233_s2] ss:$0 sm:$0xff] }
  0x5c   : > { %389 = vst [vmem:[#allocation1 + $0x1] ss:$2 sm:$0xff] %v375_v53 }
  0x61   : > { %v395_v59 = vld.sshfl [vmem:[#allocation1 + $0x10] sm:$0xff pattern:$0x75316420] }
  0x62   : > { %442 = vst [vmem:[#allocation1 + $0x10] ss:$2 sm:$0xff] %v427_v57 }
  0x63   : > { %444 = vst [vmem:[#allocation1 + $0x11] ss:$2 sm:$0xff] %v428_v58  ;;  %v394_v2 = vld.sshfl [vmem:[#allocation1] sm:$0xff pattern:$0x75316420]  ;;  %807 = vmatmul.msk.f32.gmra.mxu2 %vm255_vm2, %v344_v48 }
  0x64   : > { %808 = vmatmul.msk.f32.vlgmr.msra.gmra.mxu3 %vm255_vm2, %v394_v2  ;;  %438 = vst [vmem:[#allocation1] ss:$2 sm:$0xff] %v425_v62 }
  0x65   : > { %440 = vst [vmem:[#allocation1 + $0x1] ss:$2 sm:$0xff] %v426_v1 }
  0x6a   : > { %v446_v5 = vld.sshfl [vmem:[#allocation1 + $0x10] sm:$0xff pattern:$0x75316420] }
  0x6b   : > { %493 = vst [vmem:[#allocation1 + $0x10] ss:$2 sm:$0xff] %v478_v3 }
  0x6c   : > { %495 = vst [vmem:[#allocation1 + $0x11] ss:$2 sm:$0xff] %v479_v4  ;;  %809 = vmatmul.msk.f32.gmra.mxu3 %vm255_vm2, %v395_v59  ;;  %v445_v10 = vld.sshfl [vmem:[#allocation1] sm:$0xff pattern:$0x75316420] }
  0x6d   : > { %810 = vmatmul.msk.f32.vlgmr.msrb.gmra.mxu0 %vm255_vm2, %v445_v10  ;;  %489 = vst [vmem:[#allocation1] ss:$2 sm:$0xff] %v476_v8 }
  0x6e   : > { %491 = vst [vmem:[#allocation1 + $0x1] ss:$2 sm:$0xff] %v477_v9 }
  0x73   : > { %v497_v13 = vld.sshfl [vmem:[#allocation1 + $0x10] sm:$0xff pattern:$0x75316420] }
  0x74   : > { %545 = vst [vmem:[#allocation1 + $0x10] ss:$2 sm:$0xff] %v530_v11 }
  0x75   : > { %547 = vst [vmem:[#allocation1 + $0x11] ss:$2 sm:$0xff] %v531_v12  ;;  %811 = vmatmul.msk.f32.gmra.mxu0 %vm255_vm2, %v446_v5  ;;  %v496_v16 = vld.sshfl [vmem:[#allocation1] sm:$0xff pattern:$0x75316420] }
  0x76   : > { %812 = vmatmul.msk.f32.vlgmr.msra.gmra.mxu1 %vm255_vm2, %v496_v16  ;;  %541 = vst [vmem:[#allocation1] ss:$2 sm:$0xff] %v528_v14 }
  0x77   : > { %543 = vst [vmem:[#allocation1 + $0x1] ss:$2 sm:$0xff] %v529_v15 }
  0x7c   : > { %v549_v19 = vld.sshfl [vmem:[#allocation1 + $0x10] sm:$0xff pattern:$0x75316420] }
  0x7d   : > { %596 = vst [vmem:[#allocation1 + $0x10] ss:$2 sm:$0xff] %v581_v17 }
  0x7e   : > { %598 = vst [vmem:[#allocation1 + $0x11] ss:$2 sm:$0xff] %v582_v18  ;;  %813 = vmatmul.msk.f32.gmra.mxu1 %vm255_vm2, %v497_v13  ;;  %v548_v22 = vld.sshfl [vmem:[#allocation1] sm:$0xff pattern:$0x75316420] }
  0x7f   : > { %814 = vmatmul.msk.f32.vlgmr.msrb.gmra.mxu2 %vm255_vm2, %v548_v22  ;;  %592 = vst [vmem:[#allocation1] ss:$2 sm:$0xff] %v579_v20 }
  0x80   : > { %594 = vst [vmem:[#allocation1 + $0x1] ss:$2 sm:$0xff] %v580_v21 }
  0x85   : > { %v600_v25 = vld.sshfl [vmem:[#allocation1 + $0x10] sm:$0xff pattern:$0x75316420] }
  0x86   : > { %647 = vst [vmem:[#allocation1 + $0x10] ss:$2 sm:$0xff] %v632_v23 }
  0x87   : > { %649 = vst [vmem:[#allocation1 + $0x11] ss:$2 sm:$0xff] %v633_v24  ;;  %815 = vmatmul.msk.f32.gmra.mxu2 %vm255_vm2, %v549_v19  ;;  %v599_v28 = vld.sshfl [vmem:[#allocation1] sm:$0xff pattern:$0x75316420] }
  0x88   : > { %816 = vmatmul.msk.f32.vlgmr.msrb.gmra.mxu3 %vm255_vm2, %v599_v28  ;;  %643 = vst [vmem:[#allocation1] ss:$2 sm:$0xff] %v630_v26 }
  0x89   : > { %645 = vst [vmem:[#allocation1 + $0x1] ss:$2 sm:$0xff] %v631_v27 }
  0x8e   : > { %v651_v30 = vld.sshfl [vmem:[#allocation1 + $0x10] sm:$0xff pattern:$0x75316420] }
  0x90   : > { %817 = vmatmul.msk.f32.gmra.mxu3 %vm255_vm2, %v600_v25  ;;  %v650_v29 = vld.sshfl [vmem:[#allocation1] sm:$0xff pattern:$0x75316420] }
  0x91   : > { %818 = vmatmul.msk.f32.vlgmr.msra.gmra.mxu0 %vm255_vm2, %v650_v29 }
  0x99   : > { %819 = vmatmul.msk.f32.gmra.mxu0 %vm255_vm2, %v651_v30 }
  0xc4   : > { %v280_v31 = vpop.f32.mrf.mxu1 }
  0xc5   : > { %v277_v33 = vpop.f32.mrf.mxu0 }
  0xcf   : > { %v317_v32 = vpop.f32.mrf.mxu1 }
  0xd0   : > { %v318_v35 = vadd.f32 %v317_v32, %v277_v33 }
  0xd7   : > { %v320_v37 = vpop.f32.mrf.mxu1 }
  0xd8   : > { %v321_v42 = vadd.f32 %v320_v37, %v280_v31 }
  0xde   : > { %v366_v34 = vpop.f32.mrf.mxu2 }
  0xdf   : > { %v372_v38 = vadd.f32 %v366_v34, %v318_v35 }
  0xe6   : > { %v369_v40 = vpop.f32.mrf.mxu2 }
  0xe7   : > { %v417_v36 = vpop.f32.mrf.mxu3  ;;  %v373_v47 = vadd.f32 %v369_v40, %v321_v42 }
  0xe8   : > { %v423_v41 = vadd.f32 %v417_v36, %v372_v38 }
  0xea   : > { %v468_v39 = vpop.f32.mrf.mxu0 }
  0xeb   : > { %v474_v45 = vadd.f32 %v468_v39, %v423_v41 }
  0xef   : > { %v420_v43 = vpop.f32.mrf.mxu3 }
  0xf0   : > { %v424_v50 = vadd.f32 %v420_v43, %v373_v47 }
  0xf2   : > { %v471_v48 = vpop.f32.mrf.mxu0 }
  0xf3   : > { %v519_v44 = vpop.f32.mrf.mxu1  ;;  %v475_v56 = vadd.f32 %v471_v48, %v424_v50 }
  0xf4   : > { %v525_v49 = vadd.f32 %v519_v44, %v474_v45 }
  0xfb   : > { %v522_v54 = vpop.f32.mrf.mxu1 }
  0xfc   : > { %v526_v60 = vadd.f32 %v522_v54, %v475_v56 }
 0x102   : > { %v571_v46 = vpop.f32.mrf.mxu2 }
 0x103   : > { %v577_v51 = vadd.f32 %v571_v46, %v525_v49 }
 0x10a   : > { %v574_v58 = vpop.f32.mrf.mxu2 }
 0x10b   : > { %v622_v52 = vpop.f32.mrf.mxu3  ;;  %v578_v62 = vadd.f32 %v574_v58, %v526_v60 }
 0x10c   : > { %v628_v53 = vadd.f32 %v622_v52, %v577_v51 }
 0x10e   : > { %v673_v57 = vpop.f32.mrf.mxu0 }
 0x10f   : > { %v679_v59 = vadd.f32 %v673_v57, %v628_v53 }
 0x111   : > { %v685_v61 = vadd.f32 %v895_v55, %v679_v59 }
 0x113   : > { %v687_v63 = vmax.f32 %v685_v61, 0.0  ;;  %v625_v0 = vpop.f32.mrf.mxu3 }
 0x114   : > { %v629_v1 = vadd.f32 %v625_v0, %v578_v62 }
 0x115   : > { %690 = vst.msk [vmem:[%s207_s27] sm:$0xff] %vm689_vm3, %v687_v63 }
 0x116   : > { %v676_v2 = vpop.f32.mrf.mxu0 }
 0x117   : > { %v680_v3 = vadd.f32 %v676_v2, %v629_v1 }
 0x119   : > { %v686_v4 = vadd.f32 %v895_v55, %v680_v3 }
 0x11b   : > { %v688_v5 = vmax.f32 %v686_v4, 0.0 }
 0x11d   : > { %691 = vst.msk [vmem:[%s207_s27 + $0x8] sm:$0xff] %vm689_vm3, %v688_v5 }
 0x11e   : > { %983 = shalt.err (!%p980_p10)
}
 0x11f   : > { %s1034_s10 = smov 128   ;;  %s1035_s25 = smov 8  }
 0x120   : > { %837 = dma.vmem_to_hbm [thread:$0]  (%p1123_p7), %s706_s28, 256, %s708_s29, %s693_s16, %s1034_s10, %s1034_s10, %s1035_s25  }
 0x121 PF: > { %s722_s18 = sand.u32 1, %s1014_s12   ;;  %p1240_p12 = scmp.ge.s32.totalorder %s1026_s15, 2 }
 0x122   : > { %s723_s23 = scalar_lea.sflag [#allocation5], %s722_s18 }
 0x123   : > { %p848_p13 = pnand %p1240_p12, %p1091_p6 }
 0x125   : > { %p849_p0 = pneg %p848_p13 }
 0x127   : > { %1009 = dma.done.wait (%p849_p0), %s723_s23, 256  }
 0x128   : > { %1011 = vsyncadd (%p849_p0), %s723_s23, 4294967040  ;;  %p17_p3 = scmp.ge.s32.totalorder %s1109_s26, 4   ;;  %s1241_s12 = smov %s1018_s13 }
 0x129   : > { %s1242_s13 = smov %s1022_s14  ;;  %s1243_s14 = smov %s1119_s4 }
 0x12a   : > { %s1244_s15 = smov %s1109_s26  ;;  %19 = sbr.rel (!%p17_p3) target bundleno = 6 (0x6), region = 118 }
 0x12f   :  { %729 = vsyncpa [#allocation4], 1 }
 0x130   :  { %731 = vsyncpa [#allocation4 + $0x1], 1 }
 0x131   :  { %732 = vsyncpa [#allocation7], 1 }
 0x132   :  { %733 = vsyncpa [#allocation5], 1 }
 0x133   :  { %735 = vsyncpa [#allocation5 + $0x1], 1 }

</bundles_post_ra>
